<compile_context>
chip_gen: v7x
topology: tpu7x:2x2x1
jax: 0.10.0
libtpu: 0.0.40
codegen_flags: <defaults>
</compile_context>

<pallas_src>
import functools
import math

import jax
import jax.numpy as jnp
from jax.experimental import pallas as pl
from jax.experimental.pallas import tpu as pltpu


_LANE = 128
_SMALL_FASTPATH_BYTES = 128 * 1024      # below this, XLA's native reduce is at roofline
_MAX_BLOCK_K = 8192                     # lane-tile cap (bounds slab unroll at 64)
_MAX_BLOCK_M = 1024                     # row-tile cap (bounds scratch / reg pressure)


def _sublane_align(itemsize: int) -> int:
    """Native sublane tiling: (8,128) f32, (16,128) bf16, (32,128) int8/fp8."""
    return max(8, 32 // max(1, itemsize))


def _round_up(n: int, m: int) -> int:
    return ((n + m - 1) // m) * m


def _largest_dividing_multiple(n: int, align: int, cap: int) -> int:
    """Largest multiple of `align` that divides n and is <= cap (0 if none)."""
    best = 0
    k = align
    cap = min(cap, n)
    while k <= cap:
        if n % k == 0:
            best = k
        k += align
    return best


def _tile_byte_budget() -> int:
    """Per-tile input byte target; bumped when the chip has large VMEM."""
    budget = 8 << 20                      # safe everywhere (v7x: 64 MiB physical VMEM)
    try:
        info = pltpu.get_tpu_info()
        vmem_cap = int(getattr(info, "vmem_capacity_bytes", 0) or 0)
        if vmem_cap >= (96 << 20):        # v5e / v6e: 128 MiB physical VMEM
            budget = 12 << 20
    except Exception:
        pass
    return budget


# --------------------------------------------------------------------------- #
# Kernel: scaled row-sum.  A lane-wide (block_m, 128) f32 accumulator stays
# resident across the reduction (last) grid axis; per-step work is widening
# VPU adds on 128-lane slabs.  The cross-lane reduce + scale + 1-lane store
# happen only on the final reduction step.
# --------------------------------------------------------------------------- #
def _haar_cascade_kernel(x_ref, o_ref, acc_ref, *, scale, nslabs):
    j = pl.program_id(1)

    @pl.when(j == 0)
    def _():
        acc_ref[...] = jnp.zeros_like(acc_ref)

    partial = x_ref[:, 0:_LANE].astype(jnp.float32)
    for s in range(1, nslabs):
        partial = partial + x_ref[:, s * _LANE:(s + 1) * _LANE].astype(jnp.float32)
    acc_ref[...] += partial

    @pl.when(j == pl.num_programs(1) - 1)
    def _():
        row_sum = jnp.sum(acc_ref[...], axis=-1, keepdims=True)   # one XLU reduce / row-block
        o_ref[...] = (row_sum * jnp.float32(scale)).astype(o_ref.dtype)


def _fused_scaled_rowsum(x2: jnp.ndarray, scale: float) -> jnp.ndarray:
    """x2: (rows, cols) -> (rows, 1) = scale * sum(x2, axis=-1), one HBM pass."""
    rows, cols = x2.shape
    itemsize = jnp.dtype(x2.dtype).itemsize
    sub = _sublane_align(itemsize)

    # Tiny / lane-starved inputs: launch + per-step overhead dominates, and
    # cols < 128 would force masked sub-lane loads.  Plain XLA reduce is fine.
    if cols < _LANE or rows < sub or rows * cols * itemsize <= _SMALL_FASTPATH_BYTES:
        s = jnp.sum(x2.astype(jnp.float32), axis=-1, keepdims=True)
        return (s * jnp.float32(scale)).astype(x2.dtype)

    budget = _tile_byte_budget()

    # Lane tile: largest multiple of 128 that exactly divides cols within budget
    # (reduction axis must not have partial blocks).
    block_k = _largest_dividing_multiple(
        cols, _LANE, min(_MAX_BLOCK_K, budget // (sub * itemsize)))
    if block_k == 0:                      # cols >= 128 but not a multiple of 128
        s = jnp.sum(x2.astype(jnp.float32), axis=-1, keepdims=True)
        return (s * jnp.float32(scale)).astype(x2.dtype)

    # Row tile: fill the remaining byte budget.  cdiv grid tolerates a partial
    # last row-block (padded rows only produce output rows that Pallas masks).
    cap_m = min(_MAX_BLOCK_M, _round_up(rows, sub), budget // (block_k * itemsize))
    block_m = max(sub, (cap_m // sub) * sub)

    # Megacore: keep >= 2 steps on the parallel (row) axis whenever rows allow,
    # so both TensorCores on v7x get work.
    if rows > sub and pl.cdiv(rows, block_m) < 2:
        block_m = max(sub, (((rows + 1) // 2) // sub) * sub)

    grid = (pl.cdiv(rows, block_m), cols // block_k)
    nslabs = block_k // _LANE

    in_tile_bytes = block_m * block_k * itemsize
    scratch_bytes = block_m * _LANE * 4
    out_tile_bytes = block_m * itemsize
    vmem_limit = int(min(
        48 << 20,
        2 * in_tile_bytes + scratch_bytes + 2 * out_tile_bytes + (2 << 20)))

    cost = pl.CostEstimate(
        flops=rows * cols + rows * (_LANE + 1),
        transcendentals=0,
        bytes_accessed=rows * cols * itemsize + rows * itemsize,
    )

    return pl.pallas_call(
        functools.partial(_haar_cascade_kernel, scale=scale, nslabs=nslabs),
        out_shape=jax.ShapeDtypeStruct((rows, 1), x2.dtype),
        grid_spec=pltpu.PrefetchScalarGridSpec(
            num_scalar_prefetch=0,
            grid=grid,
            in_specs=[pl.BlockSpec((block_m, block_k), lambda i, j: (i, j))],
            out_specs=pl.BlockSpec((block_m, 1), lambda i, j: (i, 0)),
            scratch_shapes=[pltpu.VMEM((block_m, _LANE), jnp.float32)],
        ),
        compiler_params=pltpu.CompilerParams(
            dimension_semantics=("parallel", "arbitrary"),
            vmem_limit_bytes=vmem_limit,
        ),
        cost_estimate=cost,
    )(x2)


# --------------------------------------------------------------------------- #
# WaveletAttention_BIG forward
# --------------------------------------------------------------------------- #
def wavelet_attention_big(x: jnp.ndarray) -> jnp.ndarray:
    """Mirrors:
        while input[0].size(-1) > 1: input = FWT(input)
        return input.view(b, -1)
    with FWT = orthonormal Haar LL step, fused into one Pallas reduction kernel.
    """
    B, C, H, W = x.shape
    if W == 1:                                    # loop never runs
        return x.reshape(B, -1)

    # TODO(synk): odd intermediate spatial dims would need boundary handling in
    # the (assumed) FWT; not supported here.
    assert W > 0 and (W & (W - 1)) == 0, "W must be a power of 2"
    if H <= W:
        assert H > 0 and (H & (H - 1)) == 0, "H must be a power of 2 when H <= W"
    else:
        assert H % W == 0, "H must be a multiple of W when H > W"

    g = min(H, W)                                 # rows of H grouped per output
    rows = B * C * (H // g)
    cols = g * W
    scale = 1.0 / math.sqrt(float(cols))

    # Pure contiguous reshape (no transpose): (B, C, H//g, g, W) -> (rows, cols).
    x2 = x.reshape(rows, cols)
    out2 = _fused_scaled_rowsum(x2, scale)        # (rows, 1)
    return out2.reshape(B, -1)


# --------------------------------------------------------------------------- #
# Pure-JAX reference of the per-step Haar-LL cascade (the synthesized FWT).
# --------------------------------------------------------------------------- #
def _reference_cascade(x: jnp.ndarray) -> jnp.ndarray:
    inv_sqrt2 = 1.0 / math.sqrt(2.0)
    y = x.astype(jnp.float32)
    while y.shape[-1] > 1:
        y = (y[..., 0::2] + y[..., 1::2]) * inv_sqrt2              # low-pass W
        if y.shape[-2] > 1:
            y = (y[..., 0::2, :] + y[..., 1::2, :]) * inv_sqrt2    # low-pass H
    return y.reshape(y.shape[0], -1).astype(x.dtype)


if __name__ == "__main__":
    key = jax.random.PRNGKey(0)

    cases = [
        ((2, 4, 16, 16), jnp.float32),    # small -> jnp fast path
        ((2, 4, 16, 4), jnp.float32),     # cols < 128 -> fast path
        ((2, 4, 8, 1), jnp.float32),      # W == 1 -> loop never runs
        ((2, 32, 64, 64), jnp.float32),   # Pallas path, square
        ((3, 4, 64, 64), jnp.float32),    # Pallas path, partial last row block
        ((2, 8, 128, 64), jnp.float32),   # Pallas path, H > W
        ((2, 8, 128, 128), jnp.float32),  # Pallas path, multi-step reduction axis
        ((2, 16, 32, 128), jnp.bfloat16), # Pallas path, bf16 sublane alignment
    ]

    for shape, dtype in cases:
        key, sub = jax.random.split(key)
        x = jax.random.normal(sub, shape, dtype=jnp.float32).astype(dtype)

        out = jax.block_until_ready(wavelet_attention_big(x))
        ref = jax.block_until_ready(_reference_cascade(x))

        assert out.shape == ref.shape, f"shape mismatch {out.shape} vs {ref.shape}"
        tol = 2e-2 if dtype == jnp.bfloat16 else 1e-4
        ok = jnp.allclose(out.astype(jnp.float32), ref.astype(jnp.float32),
                          atol=tol, rtol=tol)
        assert ok, f"numeric mismatch for {shape} {dtype}"

    print("KERNEL_OK")
</pallas_src>

<mosaic_0001>
module attributes {stable_mosaic.version = 11 : i64} {
  func.func @_haar_cascade_kernel(%arg0: i32, %arg1: i32, %arg2: memref<32x4096xf32, #tpu.memory_space<vmem>>, %arg3: memref<32x1xf32, #tpu.memory_space<vmem>>, %arg4: memref<32x128xf32, #tpu.memory_space<vmem>>) attributes {dimension_semantics = [#tpu.dimension_semantics<parallel>, #tpu.dimension_semantics<arbitrary>], iteration_bounds = array<i64: 2, 1>, scalar_prefetch = 0 : i64, scratch_operands = 1 : i64, tpu.core_type = #tpu.core_type<tc>, window_params = [{transform_indices = @transform_0, window_bounds = array<i64: 32, 4096>}, {transform_indices = @transform_1, window_bounds = array<i64: 32, 1>}]} {
    %c0_i32 = arith.constant 0 : i32
    %0 = arith.cmpi eq, %arg1, %c0_i32 : i32
    %1 = arith.extui %0 : i1 to i32
    %c0_i32_0 = arith.constant 0 : i32
    %2 = arith.cmpi ne, %1, %c0_i32_0 : i32
    scf.if %2 {
      %cst = arith.constant 0.000000e+00 : f32
      %72 = vector.broadcast %cst : f32 to vector<32x128xf32>
      %c0_39 = arith.constant 0 : index
      %c0_40 = arith.constant 0 : index
      %73 = vector.load %arg4[%c0_39, %c0_40] : memref<32x128xf32, #tpu.memory_space<vmem>>, vector<32x128xf32>
      tpu.vector_store %arg4[%c0_39, %c0_40], %72 {strides = array<i32>} : memref<32x128xf32, #tpu.memory_space<vmem>>, vector<32x128xf32>,
    } else {
    }
    %c0 = arith.constant 0 : index
    %c0_1 = arith.constant 0 : index
    %3 = vector.load %arg2[%c0, %c0_1] : memref<32x4096xf32, #tpu.memory_space<vmem>>, vector<32x128xf32>
    %c0_2 = arith.constant 0 : index
    %c128 = arith.constant 128 : index
    %4 = vector.load %arg2[%c0_2, %c128] : memref<32x4096xf32, #tpu.memory_space<vmem>>, vector<32x128xf32>
    %5 = arith.addf %3, %4 : vector<32x128xf32>
    %c0_3 = arith.constant 0 : index
    %c256 = arith.constant 256 : index
    %6 = vector.load %arg2[%c0_3, %c256] : memref<32x4096xf32, #tpu.memory_space<vmem>>, vector<32x128xf32>
    %7 = arith.addf %5, %6 : vector<32x128xf32>
    %c0_4 = arith.constant 0 : index
    %c384 = arith.constant 384 : index
    %8 = vector.load %arg2[%c0_4, %c384] : memref<32x4096xf32, #tpu.memory_space<vmem>>, vector<32x128xf32>
    %9 = arith.addf %7, %8 : vector<32x128xf32>
    %c0_5 = arith.constant 0 : index
    %c512 = arith.constant 512 : index
    %10 = vector.load %arg2[%c0_5, %c512] : memref<32x4096xf32, #tpu.memory_space<vmem>>, vector<32x128xf32>
    %11 = arith.addf %9, %10 : vector<32x128xf32>
    %c0_6 = arith.constant 0 : index
    %c640 = arith.constant 640 : index
    %12 = vector.load %arg2[%c0_6, %c640] : memref<32x4096xf32, #tpu.memory_space<vmem>>, vector<32x128xf32>
    %13 = arith.addf %11, %12 : vector<32x128xf32>
    %c0_7 = arith.constant 0 : index
    %c768 = arith.constant 768 : index
    %14 = vector.load %arg2[%c0_7, %c768] : memref<32x4096xf32, #tpu.memory_space<vmem>>, vector<32x128xf32>
    %15 = arith.addf %13, %14 : vector<32x128xf32>
    %c0_8 = arith.constant 0 : index
    %c896 = arith.constant 896 : index
    %16 = vector.load %arg2[%c0_8, %c896] : memref<32x4096xf32, #tpu.memory_space<vmem>>, vector<32x128xf32>
    %17 = arith.addf %15, %16 : vector<32x128xf32>
    %c0_9 = arith.constant 0 : index
    %c1024 = arith.constant 1024 : index
    %18 = vector.load %arg2[%c0_9, %c1024] : memref<32x4096xf32, #tpu.memory_space<vmem>>, vector<32x128xf32>
    %19 = arith.addf %17, %18 : vector<32x128xf32>
    %c0_10 = arith.constant 0 : index
    %c1152 = arith.constant 1152 : index
    %20 = vector.load %arg2[%c0_10, %c1152] : memref<32x4096xf32, #tpu.memory_space<vmem>>, vector<32x128xf32>
    %21 = arith.addf %19, %20 : vector<32x128xf32>
    %c0_11 = arith.constant 0 : index
    %c1280 = arith.constant 1280 : index
    %22 = vector.load %arg2[%c0_11, %c1280] : memref<32x4096xf32, #tpu.memory_space<vmem>>, vector<32x128xf32>
    %23 = arith.addf %21, %22 : vector<32x128xf32>
    %c0_12 = arith.constant 0 : index
    %c1408 = arith.constant 1408 : index
    %24 = vector.load %arg2[%c0_12, %c1408] : memref<32x4096xf32, #tpu.memory_space<vmem>>, vector<32x128xf32>
    %25 = arith.addf %23, %24 : vector<32x128xf32>
    %c0_13 = arith.constant 0 : index
    %c1536 = arith.constant 1536 : index
    %26 = vector.load %arg2[%c0_13, %c1536] : memref<32x4096xf32, #tpu.memory_space<vmem>>, vector<32x128xf32>
    %27 = arith.addf %25, %26 : vector<32x128xf32>
    %c0_14 = arith.constant 0 : index
    %c1664 = arith.constant 1664 : index
    %28 = vector.load %arg2[%c0_14, %c1664] : memref<32x4096xf32, #tpu.memory_space<vmem>>, vector<32x128xf32>
    %29 = arith.addf %27, %28 : vector<32x128xf32>
    %c0_15 = arith.constant 0 : index
    %c1792 = arith.constant 1792 : index
    %30 = vector.load %arg2[%c0_15, %c1792] : memref<32x4096xf32, #tpu.memory_space<vmem>>, vector<32x128xf32>
    %31 = arith.addf %29, %30 : vector<32x128xf32>
    %c0_16 = arith.constant 0 : index
    %c1920 = arith.constant 1920 : index
    %32 = vector.load %arg2[%c0_16, %c1920] : memref<32x4096xf32, #tpu.memory_space<vmem>>, vector<32x128xf32>
    %33 = arith.addf %31, %32 : vector<32x128xf32>
    %c0_17 = arith.constant 0 : index
    %c2048 = arith.constant 2048 : index
    %34 = vector.load %arg2[%c0_17, %c2048] : memref<32x4096xf32, #tpu.memory_space<vmem>>, vector<32x128xf32>
    %35 = arith.addf %33, %34 : vector<32x128xf32>
    %c0_18 = arith.constant 0 : index
    %c2176 = arith.constant 2176 : index
    %36 = vector.load %arg2[%c0_18, %c2176] : memref<32x4096xf32, #tpu.memory_space<vmem>>, vector<32x128xf32>
    %37 = arith.addf %35, %36 : vector<32x128xf32>
    %c0_19 = arith.constant 0 : index
    %c2304 = arith.constant 2304 : index
    %38 = vector.load %arg2[%c0_19, %c2304] : memref<32x4096xf32, #tpu.memory_space<vmem>>, vector<32x128xf32>
    %39 = arith.addf %37, %38 : vector<32x128xf32>
    %c0_20 = arith.constant 0 : index
    %c2432 = arith.constant 2432 : index
    %40 = vector.load %arg2[%c0_20, %c2432] : memref<32x4096xf32, #tpu.memory_space<vmem>>, vector<32x128xf32>
    %41 = arith.addf %39, %40 : vector<32x128xf32>
    %c0_21 = arith.constant 0 : index
    %c2560 = arith.constant 2560 : index
    %42 = vector.load %arg2[%c0_21, %c2560] : memref<32x4096xf32, #tpu.memory_space<vmem>>, vector<32x128xf32>
    %43 = arith.addf %41, %42 : vector<32x128xf32>
    %c0_22 = arith.constant 0 : index
    %c2688 = arith.constant 2688 : index
    %44 = vector.load %arg2[%c0_22, %c2688] : memref<32x4096xf32, #tpu.memory_space<vmem>>, vector<32x128xf32>
    %45 = arith.addf %43, %44 : vector<32x128xf32>
    %c0_23 = arith.constant 0 : index
    %c2816 = arith.constant 2816 : index
    %46 = vector.load %arg2[%c0_23, %c2816] : memref<32x4096xf32, #tpu.memory_space<vmem>>, vector<32x128xf32>
    %47 = arith.addf %45, %46 : vector<32x128xf32>
    %c0_24 = arith.constant 0 : index
    %c2944 = arith.constant 2944 : index
    %48 = vector.load %arg2[%c0_24, %c2944] : memref<32x4096xf32, #tpu.memory_space<vmem>>, vector<32x128xf32>
    %49 = arith.addf %47, %48 : vector<32x128xf32>
    %c0_25 = arith.constant 0 : index
    %c3072 = arith.constant 3072 : index
    %50 = vector.load %arg2[%c0_25, %c3072] : memref<32x4096xf32, #tpu.memory_space<vmem>>, vector<32x128xf32>
    %51 = arith.addf %49, %50 : vector<32x128xf32>
    %c0_26 = arith.constant 0 : index
    %c3200 = arith.constant 3200 : index
    %52 = vector.load %arg2[%c0_26, %c3200] : memref<32x4096xf32, #tpu.memory_space<vmem>>, vector<32x128xf32>
    %53 = arith.addf %51, %52 : vector<32x128xf32>
    %c0_27 = arith.constant 0 : index
    %c3328 = arith.constant 3328 : index
    %54 = vector.load %arg2[%c0_27, %c3328] : memref<32x4096xf32, #tpu.memory_space<vmem>>, vector<32x128xf32>
    %55 = arith.addf %53, %54 : vector<32x128xf32>
    %c0_28 = arith.constant 0 : index
    %c3456 = arith.constant 3456 : index
    %56 = vector.load %arg2[%c0_28, %c3456] : memref<32x4096xf32, #tpu.memory_space<vmem>>, vector<32x128xf32>
    %57 = arith.addf %55, %56 : vector<32x128xf32>
    %c0_29 = arith.constant 0 : index
    %c3584 = arith.constant 3584 : index
    %58 = vector.load %arg2[%c0_29, %c3584] : memref<32x4096xf32, #tpu.memory_space<vmem>>, vector<32x128xf32>
    %59 = arith.addf %57, %58 : vector<32x128xf32>
    %c0_30 = arith.constant 0 : index
    %c3712 = arith.constant 3712 : index
    %60 = vector.load %arg2[%c0_30, %c3712] : memref<32x4096xf32, #tpu.memory_space<vmem>>, vector<32x128xf32>
    %61 = arith.addf %59, %60 : vector<32x128xf32>
    %c0_31 = arith.constant 0 : index
    %c3840 = arith.constant 3840 : index
    %62 = vector.load %arg2[%c0_31, %c3840] : memref<32x4096xf32, #tpu.memory_space<vmem>>, vector<32x128xf32>
    %63 = arith.addf %61, %62 : vector<32x128xf32>
    %c0_32 = arith.constant 0 : index
    %c3968 = arith.constant 3968 : index
    %64 = vector.load %arg2[%c0_32, %c3968] : memref<32x4096xf32, #tpu.memory_space<vmem>>, vector<32x128xf32>
    %65 = arith.addf %63, %64 : vector<32x128xf32>
    %c0_33 = arith.constant 0 : index
    %c0_34 = arith.constant 0 : index
    %66 = vector.load %arg4[%c0_33, %c0_34] : memref<32x128xf32, #tpu.memory_space<vmem>>, vector<32x128xf32>
    %67 = arith.addf %66, %65 : vector<32x128xf32>
    %c0_35 = arith.constant 0 : index
    %c0_36 = arith.constant 0 : index
    %68 = vector.load %arg4[%c0_35, %c0_36] : memref<32x128xf32, #tpu.memory_space<vmem>>, vector<32x128xf32>
    tpu.vector_store %arg4[%c0_35, %c0_36], %67 {strides = array<i32>} : memref<32x128xf32, #tpu.memory_space<vmem>>, vector<32x128xf32>,
    %c0_i32_37 = arith.constant 0 : i32
    %69 = arith.cmpi eq, %arg1, %c0_i32_37 : i32
    %70 = arith.extui %69 : i1 to i32
    %c0_i32_38 = arith.constant 0 : i32
    %71 = arith.cmpi ne, %70, %c0_i32_38 : i32
    scf.if %71 {
      %c0_39 = arith.constant 0 : index
      %c0_40 = arith.constant 0 : index
      %72 = vector.load %arg4[%c0_39, %c0_40] : memref<32x128xf32, #tpu.memory_space<vmem>>, vector<32x128xf32>
      %cst = arith.constant dense<0.000000e+00> : vector<32xf32>
      %73 = vector.multi_reduction <add>, %72, %cst [1] : vector<32x128xf32> to vector<32xf32>
      %74 = vector.shape_cast %73 : vector<32xf32> to vector<32x1xf32>
      %cst_41 = arith.constant 1.562500e-02 : f32
      %75 = vector.broadcast %cst_41 : f32 to vector<32x1xf32>
      %76 = arith.mulf %74, %75 : vector<32x1xf32>
      %c0_42 = arith.constant 0 : index
      %c0_43 = arith.constant 0 : index
      %77 = vector.load %arg3[%c0_42, %c0_43] : memref<32x1xf32, #tpu.memory_space<vmem>>, vector<32x1xf32>
      tpu.vector_store %arg3[%c0_42, %c0_43], %76 {strides = array<i32>} : memref<32x1xf32, #tpu.memory_space<vmem>>, vector<32x1xf32>,
    } else {
    }
    return
  }
  func.func @transform_0(%arg0: i32, %arg1: i32) -> (i32, i32) {
    %c0_i32 = arith.constant 0 : i32
    return %arg0, %arg1 : i32, i32
  }
  func.func @transform_1(%arg0: i32, %arg1: i32) -> (i32, i32) {
    %c0_i32 = arith.constant 0 : i32
    %c0_i32_0 = arith.constant 0 : i32
    return %arg0, %c0_i32 : i32, i32
  }
}

</mosaic_0001>

<bundles_post_ra>
// kernel: tpu_custom_call.1
= control target key start
LH: loop header
LB: loop body
LE: loop exit
PB: predicated region body
PF: predicated region fallthrough
CT: control target
= control target key end

     0   :  { %6 = vsyncpa [#allocation4], 0  ;;  %s953_s0 = inlined_call_operand.hbm [shape: f32[64,4096], index: 0, kind: input, shape index: {}]   ;;  %s954_s1 = inlined_call_operand.vmem [shape: f32[64,1], index: 1, kind: output, shape index: {}]  }
   0x1   :  { %8 = vsyncpa [#allocation4 + $0x1], 0  ;;  %s700_s6 = smov 0   ;;  %s702_s7 = smov 0  }
   0x2   :  { %s704_s8 = smov 0   ;;  %s706_s9 = smov 0  }
   0x3   :  { %s708_s10 = smov 0   ;;  %s710_s11 = smov 0  }
   0x4 LB: > { %s532_s12 = sadd.s32 4294967295, %s685_s11   ;;  %s26_s13 = sadd.s32 1, %s681_s10  ;;  %s685_s11 = sphi %s710_s11, %s14_s11   ;;  %s681_s10 = sphi %s708_s10, %s962_s10   ;;  %s677_s9 = sphi %s706_s9, %s961_s9   ;;  %s673_s8 = sphi %s704_s8, %s960_s8   ;;  %s669_s7 = sphi %s702_s7, %s959_s7   ;;  %s665_s6 = sphi %s700_s6, %s958_s6  }
   0x5   : > { %p28_p0 = scmp.ge.s32.totalorder %s26_s13, 2  ;;  %s35_s14 = sadd.s32 1, %s673_s8 }
   0x6   : > { %p42_p1 = scmp.ne.s32.totalorder %s673_s8, %s669_s7  ;;  %p43_p2 = scmp.eq.s32.totalorder %s685_s11, 0 }
   0x7   : > { %s964_s13 = smov (%p28_p0, %s26_s13), 0  ;;  %p48_p4 = scmp.ne.s32.totalorder %s669_s7, %s665_s6 }
   0x8   : > { %p736_p3 = por %p43_p2, %p42_p1  ;;  %s30_s16 = ssub.s32 %s681_s10, %s964_s13 }
   0x9   : > { %p49_p5 = scmp.eq.s32.totalorder %s532_s12, 0  ;;  %p33_p6 = scmp.eq.s32.totalorder %s30_s16, 0 }
   0xa   : > { %p554_p8 = scmp.lt.s32.totalorder %s685_s11, 2  ;;  %s98_s19 = sand.u32 1, %s673_s8  }
   0xb   : > { %p743_p7 = por %p49_p5, %p48_p4  ;;  %s547_s20 = sshll.u32 %s681_s10, 14 }
   0xc   : > { %s749_s18 = scalar_select %p33_p6, %s673_s8, %s35_s14  }
   0xd   : > { %s536_s21 = sshll.u32 %s98_s19, 10  ;;  %s756_s24 = scalar_lea.hbm %s953_s0, %s547_s20 }
   0xe   : > { %s102_s25 = scalar_lea.vmem [#allocation3], %s536_s21  ;;  %p760_p9 = pnand %p554_p8, %p736_p3 }
   0xf   : > { %s112_s26 = sshll.u32 %s102_s25, 4  ;;  %s766_s28 = scalar_lea.sflag [#allocation4], %s98_s19  ;;  %s764_s26 = int_to_ptr.vmem [resolvable:$true] %s112_s26 }
  0x10   : > { %s605_s29 = scalar_lea.hbm %s756_s24, 16384  ;;  %p607_p11 = pneg %p760_p9 }
  0x11   : > { %p606_p10 = scmp.ne.s32.totalorder %s756_s24, %s605_s29  ;;  %s610_s3 = scalar_lea.hbm %s953_s0, 32768 }
  0x12   : > { %p611_p0 = scmp.lt.u32.totalorder %s756_s24, %s953_s0  ;;  %p612_p1 = scmp.lt.u32.totalorder %s610_s3, %s605_s29 }
  0x13   : > { %p608_p12 = pnand %p607_p11, %p606_p10  ;;  %p614_p3 = scmp.lt.u32.totalorder %s605_s29, %s756_s24 }
  0x14   : > { %p613_p2 = por %p612_p1, %p611_p0 }
  0x15   : > { %p609_p13 = pneg %p608_p12 }
  0x16   : > { %p615_p4 = por %p614_p3, %p613_p2 }
  0x18   : > { %p616_p5 = pnand %p615_p4, %p609_p13 }
  0x1a   : > { %619 = shalt.err (!%p616_p5)
}
  0x1b   : > { %s620_s6 = scalar_lea.vmem %s764_s26, 16384  ;;  %s687_s12 = smov [#allocation3]  }
  0x1c   : > { %p621_p6 = scmp.ne.s32.totalorder %s764_s26, %s620_s6  ;;  %s625_s14 = sshll.u32 %s687_s12, 4  ;;  %s626_s14 = int_to_ptr.vmem [resolvable:$false] %s625_s14 }
  0x1d   : > { %s627_s15 = scalar_lea.vmem %s626_s14, 32768  ;;  %p628_p12 = scmp.lt.s32.totalorder %s764_s26, %s626_s14 }
  0x1e   : > { %p623_p8 = pnand %p621_p6, %p607_p11  ;;  %p629_p0 = scmp.lt.s32.totalorder %s627_s15, %s620_s6 }
  0x20   : > { %p624_p10 = pneg %p623_p8  ;;  %p630_p1 = por %p629_p0, %p628_p12 }
  0x22   : > { %p631_p2 = pnand %p630_p1, %p624_p10 }
  0x24   : > { %634 = shalt.err (!%p631_p2)
}
  0x25   : > { %s688_s16 = smov 4096   ;;  %s689_s19 = smov 256  }
  0x26   : > { %553 = dma.hbm_to_vmem [thread:$0]  (!%p760_p9), %s756_s24, 16384, %s764_s26, %s766_s28, %s688_s16, %s688_s16, %s689_s19  }
  0x27   : > { %p540_p11 = scmp.ge.s32.totalorder %s685_s11, 1  ;;  %p120_p13 = scmp.lt.s32.totalorder %s685_s11, 3 }
  0x29   : > { %p121_p3 = pnand %p540_p11, %p120_p13 }
  0x2a   : > { %s126_s20 = sand.u32 (!%p121_p3), 1, %s669_s7  }
  0x2b   : > { %124 = sbr.rel (%p121_p3) target bundleno = 277 (0x115), region = 24  ;;  %s541_s21 = sshll.u32 (!%p121_p3), %s126_s20, 10 }
  0x2c   : > { %s127_s22 = scalar_lea.sflag (!%p121_p3), [#allocation4], %s126_s20  ;;  %s797_s23 = scalar_lea.vmem (!%p121_p3), [#allocation3], %s541_s21 }
  0x32   : > { %660 = dma.done.wait (%p743_p7), %s127_s22, 16384  }
  0x33   : > { %662 = vsyncadd (%p743_p7), %s127_s22, 4294950912  ;;  %v165_v0 = vld [vmem:[%s797_s23] sm:$0xff]  ;;  %v169_v1 = vld [vmem:[%s797_s23 + $0x8] sm:$0xff]  ;;  %s542_s17 = sshll.u32 %s677_s9, 2  ;;  %vm448_vm0 = vcmask 7168  }
  0x34   : > { %v177_v2 = vld [vmem:[%s797_s23 + $0x10] sm:$0xff]  ;;  %v173_v3 = vadd.f32 %v169_v1, %v165_v0  ;;  %v185_v4 = vld [vmem:[%s797_s23 + $0x18] sm:$0xff]  ;;  %v193_v6 = vld [vmem:[%s797_s23 + $0x20] sm:$0xff]  ;;  %p152_p7 = scmp.lt.s32.totalorder %s542_s17, 7 }
  0x35   : > { %v201_v8 = vld [vmem:[%s797_s23 + $0x28] sm:$0xff]  ;;  %v209_v10 = vld [vmem:[%s797_s23 + $0x30] sm:$0xff]  ;;  %v217_v12 = vld [vmem:[%s797_s23 + $0x38] sm:$0xff] }
  0x36   : > { %v181_v5 = vadd.f32 %v177_v2, %v173_v3  ;;  %v167_v13 = vld [vmem:[%s797_s23 + $0x200] sm:$0xff]  ;;  %v171_v15 = vld [vmem:[%s797_s23 + $0x208] sm:$0xff]  ;;  %v179_v16 = vld [vmem:[%s797_s23 + $0x210] sm:$0xff]  ;;  %s966_s17 = smov (!%p152_p7, %s542_s17), 7 }
  0x37   : > { %v225_v17 = vld [vmem:[%s797_s23 + $0x40] sm:$0xff]  ;;  %v175_v18 = vadd.f32 %v171_v15, %v167_v13  ;;  %v187_v20 = vld [vmem:[%s797_s23 + $0x218] sm:$0xff]  ;;  %v233_v21 = vld [vmem:[%s797_s23 + $0x48] sm:$0xff]  ;;  %s543_s24 = sshll.u32 %s966_s17, 3 }
  0x38   : > { %v189_v7 = vadd.f32 %v185_v4, %v181_v5  ;;  %v195_v24 = vld [vmem:[%s797_s23 + $0x220] sm:$0xff]  ;;  %v241_v25 = vld [vmem:[%s797_s23 + $0x50] sm:$0xff]  ;;  %v203_v28 = vld [vmem:[%s797_s23 + $0x228] sm:$0xff]  ;;  %s155_s27 = scalar_lea.vmem %s954_s1, %s543_s24 }
  0x39   : > { %v183_v22 = vadd.f32 %v179_v16, %v175_v18  ;;  %v249_v29 = vld [vmem:[%s797_s23 + $0x58] sm:$0xff]  ;;  %v211_v32 = vld [vmem:[%s797_s23 + $0x230] sm:$0xff]  ;;  %v257_v33 = vld [vmem:[%s797_s23 + $0x60] sm:$0xff] }
  0x3a   : > { %v197_v9 = vadd.f32 %v193_v6, %v189_v7  ;;  %v219_v36 = vld [vmem:[%s797_s23 + $0x238] sm:$0xff]  ;;  %v166_v37 = vld [vmem:[%s797_s23 + $0x100] sm:$0xff]  ;;  %v170_v38 = vld [vmem:[%s797_s23 + $0x108] sm:$0xff] }
  0x3b   : > { %v191_v26 = vadd.f32 %v187_v20, %v183_v22  ;;  %v265_v39 = vld [vmem:[%s797_s23 + $0x68] sm:$0xff]  ;;  %v174_v41 = vadd.f32 %v170_v38, %v166_v37  ;;  %v178_v42 = vld [vmem:[%s797_s23 + $0x110] sm:$0xff]  ;;  %v227_v44 = vld [vmem:[%s797_s23 + $0x240] sm:$0xff] }
  0x3c   : > { %v205_v11 = vadd.f32 %v201_v8, %v197_v9  ;;  %v186_v45 = vld [vmem:[%s797_s23 + $0x118] sm:$0xff]  ;;  %v273_v46 = vld [vmem:[%s797_s23 + $0x70] sm:$0xff]  ;;  %v235_v50 = vld [vmem:[%s797_s23 + $0x248] sm:$0xff] }
  0x3d   : > { %v199_v30 = vadd.f32 %v195_v24, %v191_v26  ;;  %v182_v48 = vadd.f32 %v178_v42, %v174_v41  ;;  %v194_v51 = vld [vmem:[%s797_s23 + $0x120] sm:$0xff]  ;;  %v281_v52 = vld [vmem:[%s797_s23 + $0x78] sm:$0xff]  ;;  %v243_v56 = vld [vmem:[%s797_s23 + $0x250] sm:$0xff] }
  0x3e   : > { %v213_v14 = vadd.f32 %v209_v10, %v205_v11  ;;  %v202_v57 = vld [vmem:[%s797_s23 + $0x128] sm:$0xff]  ;;  %v289_v58 = vld [vmem:[%s797_s23 + $0x80] sm:$0xff]  ;;  %v251_v62 = vld [vmem:[%s797_s23 + $0x258] sm:$0xff] }
  0x3f   : > { %v207_v34 = vadd.f32 %v203_v28, %v199_v30  ;;  %v190_v54 = vadd.f32 %v186_v45, %v182_v48  ;;  %v210_v63 = vld [vmem:[%s797_s23 + $0x130] sm:$0xff]  ;;  %v297_v0 = vld [vmem:[%s797_s23 + $0x88] sm:$0xff]  ;;  %v259_v5 = vld [vmem:[%s797_s23 + $0x260] sm:$0xff] }
  0x40   : > { %v221_v19 = vadd.f32 %v217_v12, %v213_v14  ;;  %v305_v4 = vld [vmem:[%s797_s23 + $0x90] sm:$0xff]  ;;  %v218_v6 = vld [vmem:[%s797_s23 + $0x138] sm:$0xff]  ;;  %v168_v9 = vld [vmem:[%s797_s23 + $0x300] sm:$0xff] }
  0x41   : > { %v215_v40 = vadd.f32 %v211_v32, %v207_v34  ;;  %v198_v60 = vadd.f32 %v194_v51, %v190_v54  ;;  %v172_v10 = vld [vmem:[%s797_s23 + $0x308] sm:$0xff]  ;;  %v180_v11 = vld [vmem:[%s797_s23 + $0x310] sm:$0xff]  ;;  %v226_v14 = vld [vmem:[%s797_s23 + $0x140] sm:$0xff] }
  0x42   : > { %v229_v23 = vadd.f32 %v225_v17, %v221_v19  ;;  %v267_v13 = vld [vmem:[%s797_s23 + $0x268] sm:$0xff]  ;;  %v176_v15 = vadd.f32 %v172_v10, %v168_v9  ;;  %v313_v16 = vld [vmem:[%s797_s23 + $0x98] sm:$0xff]  ;;  %v321_v24 = vld [vmem:[%s797_s23 + $0xa0] sm:$0xff] }
  0x43   : > { %v223_v47 = vadd.f32 %v219_v36, %v215_v40  ;;  %v206_v2 = vadd.f32 %v202_v57, %v198_v60  ;;  %v188_v19 = vld [vmem:[%s797_s23 + $0x318] sm:$0xff]  ;;  %v234_v22 = vld [vmem:[%s797_s23 + $0x148] sm:$0xff]  ;;  %v242_v30 = vld [vmem:[%s797_s23 + $0x150] sm:$0xff] }
  0x44   : > { %v237_v27 = vadd.f32 %v233_v21, %v229_v23  ;;  %v275_v21 = vld [vmem:[%s797_s23 + $0x270] sm:$0xff]  ;;  %v184_v23 = vadd.f32 %v180_v11, %v176_v15  ;;  %v329_v32 = vld [vmem:[%s797_s23 + $0xa8] sm:$0xff]  ;;  %v291_v37 = vld [vmem:[%s797_s23 + $0x280] sm:$0xff] }
  0x45   : > { %v231_v53 = vadd.f32 %v227_v44, %v223_v47  ;;  %v214_v8 = vadd.f32 %v210_v63, %v206_v2  ;;  %v250_v38 = vld [vmem:[%s797_s23 + $0x158] sm:$0xff]  ;;  %v337_v40 = vld [vmem:[%s797_s23 + $0xb0] sm:$0xff]  ;;  %v299_v45 = vld [vmem:[%s797_s23 + $0x288] sm:$0xff] }
  0x46   : > { %v245_v31 = vadd.f32 %v241_v25, %v237_v27  ;;  %v196_v27 = vld [vmem:[%s797_s23 + $0x320] sm:$0xff]  ;;  %v345_v48 = vld [vmem:[%s797_s23 + $0xb8] sm:$0xff]  ;;  %v266_v54 = vld [vmem:[%s797_s23 + $0x168] sm:$0xff] }
  0x47   : > { %v239_v59 = vadd.f32 %v235_v50, %v231_v53  ;;  %v222_v18 = vadd.f32 %v218_v6, %v214_v8  ;;  %v220_v51 = vld [vmem:[%s797_s23 + $0x338] sm:$0xff]  ;;  %v307_v53 = vld [vmem:[%s797_s23 + $0x290] sm:$0xff] }
  0x48   : > { %v253_v35 = vadd.f32 %v249_v29, %v245_v31  ;;  %v283_v29 = vld [vmem:[%s797_s23 + $0x278] sm:$0xff]  ;;  %v192_v31 = vadd.f32 %v188_v19, %v184_v23  ;;  %v369_v8 = vld [vmem:[%s797_s23 + $0xd0] sm:$0xff] }
  0x49   : > { %v247_v1 = vadd.f32 %v243_v56, %v239_v59  ;;  %v230_v26 = vadd.f32 %v226_v14, %v222_v18  ;;  %v353_v56 = vld [vmem:[%s797_s23 + $0xc0] sm:$0xff]  ;;  %v282_v6 = vld [vmem:[%s797_s23 + $0x178] sm:$0xff]  ;;  %v244_v11 = vld [vmem:[%s797_s23 + $0x350] sm:$0xff] }
  0x4a   : > { %v261_v43 = vadd.f32 %v257_v33, %v253_v35  ;;  %v204_v35 = vld [vmem:[%s797_s23 + $0x328] sm:$0xff]  ;;  %v228_v59 = vld [vmem:[%s797_s23 + $0x340] sm:$0xff]  ;;  %v252_v19 = vld [vmem:[%s797_s23 + $0x358] sm:$0xff] }
  0x4b   : > { %v255_v7 = vadd.f32 %v251_v62, %v247_v1  ;;  %v238_v34 = vadd.f32 %v234_v22, %v230_v26  ;;  %v274_v62 = vld [vmem:[%s797_s23 + $0x170] sm:$0xff]  ;;  %v290_v14 = vld [vmem:[%s797_s23 + $0x180] sm:$0xff]  ;;  %v298_v22 = vld [vmem:[%s797_s23 + $0x188] sm:$0xff] }
  0x4c   : > { %v269_v49 = vadd.f32 %v265_v39, %v261_v43  ;;  %v200_v39 = vadd.f32 %v196_v27, %v192_v31  ;;  %v212_v43 = vld [vmem:[%s797_s23 + $0x330] sm:$0xff]  ;;  %v260_v27 = vld [vmem:[%s797_s23 + $0x360] sm:$0xff] }
  0x4d   : > { %v263_v17 = vadd.f32 %v259_v5, %v255_v7  ;;  %v246_v42 = vadd.f32 %v242_v30, %v238_v34  ;;  %v323_v5 = vld [vmem:[%s797_s23 + $0x2a0] sm:$0xff]  ;;  %v306_v30 = vld [vmem:[%s797_s23 + $0x190] sm:$0xff] }
  0x4e   : > { %v277_v55 = vadd.f32 %v273_v46, %v269_v49  ;;  %v258_v46 = vld [vmem:[%s797_s23 + $0x160] sm:$0xff]  ;;  %v208_v47 = vadd.f32 %v204_v35, %v200_v39  ;;  %v268_v35 = vld [vmem:[%s797_s23 + $0x368] sm:$0xff] }
  0x4f   : > { %v271_v25 = vadd.f32 %v267_v13, %v263_v17  ;;  %v254_v50 = vadd.f32 %v250_v38, %v246_v42  ;;  %v331_v13 = vld [vmem:[%s797_s23 + $0x2a8] sm:$0xff]  ;;  %v314_v38 = vld [vmem:[%s797_s23 + $0x198] sm:$0xff] }
  0x50   : > { %v285_v61 = vadd.f32 %v281_v52, %v277_v55  ;;  %v216_v55 = vadd.f32 %v212_v43, %v208_v47  ;;  %v276_v43 = vld [vmem:[%s797_s23 + $0x370] sm:$0xff] }
  0x51   : > { %v279_v33 = vadd.f32 %v275_v21, %v271_v25  ;;  %v339_v21 = vld [vmem:[%s797_s23 + $0x2b0] sm:$0xff] }
  0x52   : > { %v293_v3 = vadd.f32 %v289_v58, %v285_v61  ;;  %v262_v58 = vadd.f32 %v258_v46, %v254_v50  ;;  %v315_v61 = vld [vmem:[%s797_s23 + $0x298] sm:$0xff]  ;;  %v224_v63 = vadd.f32 %v220_v51, %v216_v55  ;;  %v322_v46 = vld [vmem:[%s797_s23 + $0x1a0] sm:$0xff] }
  0x53   : > { %v287_v41 = vadd.f32 %v283_v29, %v279_v33  ;;  %v347_v29 = vld [vmem:[%s797_s23 + $0x2b8] sm:$0xff] }
  0x54   : > { %v301_v12 = vadd.f32 %v297_v0, %v293_v3  ;;  %v361_v0 = vld [vmem:[%s797_s23 + $0xc8] sm:$0xff]  ;;  %v270_v2 = vadd.f32 %v266_v54, %v262_v58  ;;  %v232_v7 = vadd.f32 %v228_v59, %v224_v63  ;;  %v284_v51 = vld [vmem:[%s797_s23 + $0x378] sm:$0xff]  ;;  %v292_v58 = vld [vmem:[%s797_s23 + $0x380] sm:$0xff] }
  0x55   : > { %v295_v49 = vadd.f32 %v291_v37, %v287_v41  ;;  %v236_v3 = vld [vmem:[%s797_s23 + $0x348] sm:$0xff]  ;;  %v355_v37 = vld [vmem:[%s797_s23 + $0x2c0] sm:$0xff] }
  0x56   : > { %v309_v20 = vadd.f32 %v305_v4, %v301_v12  ;;  %v278_v10 = vadd.f32 %v274_v62, %v270_v2  ;;  %v240_v15 = vadd.f32 %v236_v3, %v232_v7  ;;  %v330_v54 = vld [vmem:[%s797_s23 + $0x1a8] sm:$0xff]  ;;  %v387_v2 = vld [vmem:[%s797_s23 + $0x2e0] sm:$0xff]  ;;  %v346_v3 = vld [vmem:[%s797_s23 + $0x1b8] sm:$0xff] }
  0x57   : > { %v303_v57 = vadd.f32 %v299_v45, %v295_v49  ;;  %v363_v45 = vld [vmem:[%s797_s23 + $0x2c8] sm:$0xff]  ;;  %v308_v7 = vld [vmem:[%s797_s23 + $0x390] sm:$0xff] }
  0x58   : > { %v317_v28 = vadd.f32 %v313_v16, %v309_v20  ;;  %v377_v16 = vld [vmem:[%s797_s23 + $0xd8] sm:$0xff]  ;;  %v286_v18 = vadd.f32 %v282_v6, %v278_v10  ;;  %v248_v23 = vadd.f32 %v244_v11, %v240_v15  ;;  %v362_v15 = vld [vmem:[%s797_s23 + $0x1c8] sm:$0xff] }
  0x59   : > { %v311_v1 = vadd.f32 %v307_v53, %v303_v57  ;;  %v371_v53 = vld [vmem:[%s797_s23 + $0x2d0] sm:$0xff] }
  0x5a   : > { %v325_v36 = vadd.f32 %v321_v24, %v317_v28  ;;  %v385_v24 = vld [vmem:[%s797_s23 + $0xe0] sm:$0xff]  ;;  %v294_v26 = vadd.f32 %v290_v14, %v286_v18  ;;  %v256_v31 = vadd.f32 %v252_v19, %v248_v23  ;;  %v403_v14 = vld [vmem:[%s797_s23 + $0x2f0] sm:$0xff] }
  0x5b   : > { %v319_v9 = vadd.f32 %v315_v61, %v311_v1  ;;  %v338_v61 = vld [vmem:[%s797_s23 + $0x1b0] sm:$0xff]  ;;  %v300_v1 = vld [vmem:[%s797_s23 + $0x388] sm:$0xff]  ;;  %v324_v19 = vld [vmem:[%s797_s23 + $0x3a0] sm:$0xff] }
  0x5c   : > { %v333_v44 = vadd.f32 %v329_v32, %v325_v36  ;;  %v393_v32 = vld [vmem:[%s797_s23 + $0xe8] sm:$0xff]  ;;  %v302_v34 = vadd.f32 %v298_v22, %v294_v26  ;;  %v264_v39 = vadd.f32 %v260_v27, %v256_v31  ;;  %v378_v26 = vld [vmem:[%s797_s23 + $0x1d8] sm:$0xff]  ;;  %v386_v31 = vld [vmem:[%s797_s23 + $0x1e0] sm:$0xff] }
  0x5d   : > { %v327_v17 = vadd.f32 %v323_v5, %v319_v9  ;;  %v354_v9 = vld [vmem:[%s797_s23 + $0x1c0] sm:$0xff] }
  0x5e   : > { %v341_v52 = vadd.f32 %v337_v40, %v333_v44  ;;  %v401_v40 = vld [vmem:[%s797_s23 + $0xf0] sm:$0xff]  ;;  %v310_v42 = vadd.f32 %v306_v30, %v302_v34  ;;  %v272_v47 = vadd.f32 %v268_v35, %v264_v39  ;;  %v348_v34 = vld [vmem:[%s797_s23 + $0x3b8] sm:$0xff]  ;;  %v394_v35 = vld [vmem:[%s797_s23 + $0x1e8] sm:$0xff] }
  0x5f   : > { %v335_v25 = vadd.f32 %v331_v13, %v327_v17  ;;  %v316_v13 = vld [vmem:[%s797_s23 + $0x398] sm:$0xff]  ;;  %v340_v30 = vld [vmem:[%s797_s23 + $0x3b0] sm:$0xff] }
  0x60   : > { %v349_v60 = vadd.f32 %v345_v48, %v341_v52  ;;  %v409_v48 = vld [vmem:[%s797_s23 + $0xf8] sm:$0xff]  ;;  %v318_v50 = vadd.f32 %v314_v38, %v310_v42  ;;  %v280_v55 = vadd.f32 %v276_v43, %v272_v47  ;;  %v356_v38 = vld [vmem:[%s797_s23 + $0x3c0] sm:$0xff]  ;;  %v402_v39 = vld [vmem:[%s797_s23 + $0x1f0] sm:$0xff] }
  0x61   : > { %v343_v33 = vadd.f32 %v339_v21, %v335_v25  ;;  %v370_v21 = vld [vmem:[%s797_s23 + $0x1d0] sm:$0xff]  ;;  %v332_v25 = vld [vmem:[%s797_s23 + $0x3a8] sm:$0xff]  ;;  %v410_v43 = vld [vmem:[%s797_s23 + $0x1f8] sm:$0xff] }
  0x62   : > { %v357_v4 = vadd.f32 %v353_v56, %v349_v60  ;;  %v326_v57 = vadd.f32 %v322_v46, %v318_v50  ;;  %v379_v60 = vld [vmem:[%s797_s23 + $0x2d8] sm:$0xff]  ;;  %v288_v62 = vadd.f32 %v284_v51, %v280_v55  ;;  %v364_v42 = vld [vmem:[%s797_s23 + $0x3c8] sm:$0xff]  ;;  %v372_v46 = vld [vmem:[%s797_s23 + $0x3d0] sm:$0xff] }
  0x63   : > { %v351_v41 = vadd.f32 %v347_v29, %v343_v33  ;;  %v388_v51 = vld [vmem:[%s797_s23 + $0x3e0] sm:$0xff]  ;;  %v404_v55 = vld [vmem:[%s797_s23 + $0x3f0] sm:$0xff] }
  0x64   : > { %v365_v12 = vadd.f32 %v361_v0, %v357_v4  ;;  %v334_v0 = vadd.f32 %v330_v54, %v326_v57  ;;  %v296_v4 = vadd.f32 %v292_v58, %v288_v62  ;;  %v412_v57 = vld [vmem:[%s797_s23 + $0x3f8] sm:$0xff] }
  0x65   : > { %v359_v49 = vadd.f32 %v355_v37, %v351_v41 }
  0x66   : > { %v373_v20 = vadd.f32 %v369_v8, %v365_v12  ;;  %v342_v6 = vadd.f32 %v338_v61, %v334_v0  ;;  %v395_v8 = vld [vmem:[%s797_s23 + $0x2e8] sm:$0xff]  ;;  %v304_v10 = vadd.f32 %v300_v1, %v296_v4 }
  0x67   : > { %v367_v56 = vadd.f32 %v363_v45, %v359_v49  ;;  %v380_v49 = vld [vmem:[%s797_s23 + $0x3d8] sm:$0xff] }
  0x68   : > { %v381_v28 = vadd.f32 %v377_v16, %v373_v20  ;;  %v350_v12 = vadd.f32 %v346_v3, %v342_v6  ;;  %v312_v16 = vadd.f32 %v308_v7, %v304_v10  ;;  %v411_v20 = vld [vmem:[%s797_s23 + $0x2f8] sm:$0xff] }
  0x69   : > { %v375_v63 = vadd.f32 %v371_v53, %v367_v56  ;;  %v396_v53 = vld [vmem:[%s797_s23 + $0x3e8] sm:$0xff] }
  0x6a   : > { %v389_v36 = vadd.f32 %v385_v24, %v381_v28  ;;  %v358_v18 = vadd.f32 %v354_v9, %v350_v12  ;;  %v320_v22 = vadd.f32 %v316_v13, %v312_v16 }
  0x6b   : > { %v383_v5 = vadd.f32 %v379_v60, %v375_v63 }
  0x6c   : > { %v397_v44 = vadd.f32 %v393_v32, %v389_v36  ;;  %v366_v24 = vadd.f32 %v362_v15, %v358_v18  ;;  %v328_v27 = vadd.f32 %v324_v19, %v320_v22 }
  0x6d   : > { %v391_v11 = vadd.f32 %v387_v2, %v383_v5 }
  0x6e   : > { %v405_v52 = vadd.f32 %v401_v40, %v397_v44  ;;  %v374_v29 = vadd.f32 %v370_v21, %v366_v24  ;;  %v336_v32 = vadd.f32 %v332_v25, %v328_v27 }
  0x6f   : > { %v399_v17 = vadd.f32 %v395_v8, %v391_v11 }
  0x70   : > { %v413_v59 = vadd.f32 %v409_v48, %v405_v52  ;;  %v382_v33 = vadd.f32 %v378_v26, %v374_v29  ;;  %v344_v36 = vadd.f32 %v340_v30, %v336_v32 }
  0x71   : > { %v407_v23 = vadd.f32 %v403_v14, %v399_v17 }
  0x72   : > { %436 = vadd.xlane.f32.xlu0 %v413_v59  ;;  %v390_v37 = vadd.f32 %v386_v31, %v382_v33  ;;  %v352_v40 = vadd.f32 %v348_v34, %v344_v36 }
  0x73   : > { %v415_v28 = vadd.f32 %v411_v20, %v407_v23 }
  0x74   : > { %v398_v41 = vadd.f32 %v394_v35, %v390_v37  ;;  %v360_v44 = vadd.f32 %v356_v38, %v352_v40 }
  0x75   : > { %440 = vadd.xlane.f32.xlu1 %v415_v28 }
  0x76   : > { %v406_v45 = vadd.f32 %v402_v39, %v398_v41  ;;  %v368_v47 = vadd.f32 %v364_v42, %v360_v44 }
  0x78   : > { %v414_v48 = vadd.f32 %v410_v43, %v406_v45  ;;  %v376_v50 = vadd.f32 %v372_v46, %v368_v47 }
  0x7a   : > { %438 = vadd.xlane.f32.xlu0 %v414_v48  ;;  %v384_v52 = vadd.f32 %v380_v49, %v376_v50 }
  0x7c   : > { %v392_v54 = vadd.f32 %v388_v51, %v384_v52 }
  0x7e   : > { %v400_v56 = vadd.f32 %v396_v53, %v392_v54 }
  0x80   : > { %v408_v58 = vadd.f32 %v404_v55, %v400_v56 }
  0x82   : > { %v416_v59 = vadd.f32 %v412_v57, %v408_v58 }
  0x84   : > { %442 = vadd.xlane.f32.xlu1 %v416_v59 }
  0xff   : > { %v437_v60 = vpop.xlane.xlu0 %436 }
 0x100   : > { %v444_v61 = vmul.f32 0.015625, %v437_v60 }
 0x102   : > { %449 = vst.msk [vmem:[%s155_s27] sm:$0xff] %vm448_vm0, %v444_v61  ;;  %v441_v62 = vpop.xlane.xlu1 %440 }
 0x103   : > { %v446_v1 = vmul.f32 0.015625, %v441_v62 }
 0x105   : > { %451 = vst.msk [vmem:[%s155_s27 + $0x10] sm:$0xff] %vm448_vm0, %v446_v1 }
 0x107   : > { %v439_v63 = vpop.xlane.xlu0 %438 }
 0x108   : > { %v445_v0 = vmul.f32 0.015625, %v439_v63 }
 0x10a   : > { %450 = vst.msk [vmem:[%s155_s27 + $0x8] sm:$0xff] %vm448_vm0, %v445_v0 }
 0x111   : > { %v443_v2 = vpop.xlane.xlu1 %442 }
 0x112   : > { %v447_v3 = vmul.f32 0.015625, %v443_v2 }
 0x114   : > { %452 = vst.msk [vmem:[%s155_s27 + $0x18] sm:$0xff] %vm448_vm0, %v447_v3 }
 0x115 PF: > { %s14_s11 = sadd.s32 1, %s685_s11   ;;  %s958_s6 = smov %s669_s7 }
 0x116   : > { %p11_p9 = scmp.ge.s32.totalorder %s14_s11, 4   ;;  %s959_s7 = smov %s673_s8 }
 0x117   : > { %s960_s8 = smov %s749_s18  ;;  %s961_s9 = smov %s681_s10 }
 0x118   : > { %s962_s10 = smov %s964_s13  ;;  %13 = sbr.rel (!%p11_p9) target bundleno = 4 (0x4), region = 72 }
 0x11f   :  { %475 = vsyncpa [#allocation4], 1 }
 0x120   :  { %477 = vsyncpa [#allocation4 + $0x1], 1 }

</bundles_post_ra>
